<compile_context>
chip_gen: v7x
topology: tpu7x:2x2x1
jax: 0.10.0
libtpu: 0.0.40
codegen_flags: <defaults>
</compile_context>

<pallas_src>
import functools

import numpy as np
import jax
import jax.numpy as jnp
from jax import lax
from jax.experimental import pallas as pl
from jax.experimental.pallas import tpu as pltpu


def _ceil_to(x, m):
    return ((x + m - 1) // m) * m


def _cdiv(a, b):
    return (a + b - 1) // b


# --------------------------------- the kernel ---------------------------------
def _build_kernel(*, val_flag, n_chunks, chunk, tb, n1, n2, b,
                  lane_rem, row_rem):
    inv_n1 = np.float32(1.0 / n1)
    inv_n2 = np.float32(1.0 / n2)
    inv_b = np.float32(1.0 / b)
    n_sub = chunk // 128
    valid_last = n1 - (n_chunks - 1) * chunk   # valid lanes in the final chunk

    def _accumulate(acc_ref, sq):
        # lane-parallel accumulation: pure VPU adds of aligned 128-lane slices.
        acc = acc_ref[...]
        for j in range(n_sub):
            acc = acc + sq[:, j * 128:(j + 1) * 128]
        acc_ref[...] = acc

    def kernel(thr_ref, o1_ref, t1_ref, o2_ref, t2_ref, out_ref, acc_ref):
        i = pl.program_id(0)     # batch tile  (parallel)
        k = pl.program_id(1)     # lane chunk  (reduction)

        @pl.when(k == 0)
        def _():
            acc_ref[...] = jnp.zeros_like(acc_ref)

        d1 = o1_ref[...].astype(jnp.float32) - t1_ref[...].astype(jnp.float32)
        sq = d1 * d1                                           # (tb, chunk) f32

        if lane_rem:
            @pl.when(k == n_chunks - 1)
            def _():
                lane = lax.broadcasted_iota(jnp.int32, (tb, chunk), 1)
                _accumulate(acc_ref, jnp.where(lane < valid_last, sq, 0.0))

            @pl.when(k != n_chunks - 1)
            def _():
                _accumulate(acc_ref, sq)
        else:
            _accumulate(acc_ref, sq)

        @pl.when(k == n_chunks - 1)
        def _():
            # single cross-lane reduce per batch tile
            sl1 = jnp.sum(acc_ref[...], axis=1, keepdims=True) * inv_n1   # (tb, 1)
            d2 = o2_ref[...].astype(jnp.float32) - t2_ref[...].astype(jnp.float32)
            sl2 = jnp.sum(d2 * d2, axis=1, keepdims=True) * inv_n2        # (tb, 1)

            if val_flag:
                w1, w2 = sl1, sl2
            else:
                thr = thr_ref[0]
                # self-paced weights v = (super_loss < threshold).float()
                w1 = jnp.where(sl1 < thr, sl1, 0.0)
                w2 = jnp.where(sl2 < thr, sl2, 0.0)

            if row_rem:
                # mask out-of-range batch rows of the last (partial) batch tile
                row = lax.broadcasted_iota(jnp.int32, (tb, 1), 0)
                valid = (i * tb + row) < b
                w1 = jnp.where(valid, w1, 0.0)
                w2 = jnp.where(valid, w2, 0.0)

            p1 = (jnp.sum(w1, axis=0, keepdims=True) * inv_b).reshape(1, 1, 1)
            p2 = (jnp.sum(w2, axis=0, keepdims=True) * inv_b).reshape(1, 1, 1)
            p1v = jnp.broadcast_to(p1, (1, 1, 128))
            p2v = jnp.broadcast_to(p2, (1, 1, 128))
            lane = lax.broadcasted_iota(jnp.int32, (1, 1, 128), 2)
            # lane 0 = partial loss1, lane 1 = partial loss2, rest 0
            out_ref[...] = jnp.where(lane == 0, p1v,
                                     jnp.where(lane == 1, p2v, jnp.zeros_like(p1v)))

    return kernel


# --------------------------------- wrapper ---------------------------------
@functools.partial(jax.jit,
                   static_argnames=("val_flag", "max_chunk", "target_block_bytes"))
def spl_loss_yield_ra(output1, target1, output2, target2, threshold, *,
                      val_flag, max_chunk=2048, target_block_bytes=4 << 20):
    output1 = jnp.asarray(output1)
    target1 = jnp.asarray(target1)
    output2 = jnp.asarray(output2)
    target2 = jnp.asarray(target2)

    B, N1 = output1.shape
    _, N2 = output2.shape

    # --- tile selection: wide lane-dense chunks, batch tiles bound VMEM ---
    max_chunk = max(128, (max_chunk // 128) * 128)
    chunk = min(_ceil_to(N1, 128), max_chunk)
    n_chunks = _cdiv(N1, chunk)
    lane_rem = (N1 % chunk) != 0

    # Aim ~target_block_bytes (f32-equivalent) per output1/target1 block so the
    # double-buffered working set stays well inside the explicit VMEM limit on
    # v5e / v6e / v7x.  Shrink the batch tile, never the chunk width.
    target_rows = max(8, target_block_bytes // (chunk * 4))
    if B <= target_rows:
        tb = B                       # block dim == full batch dim (always legal)
        n_btiles = 1
        row_rem = False
    else:
        tb = max(8, (target_rows // 8) * 8)
        n_btiles = _cdiv(B, tb)
        row_rem = (B % tb) != 0

    thr = jnp.asarray(threshold, jnp.float32).reshape((1,))

    kernel = _build_kernel(val_flag=bool(val_flag), n_chunks=n_chunks,
                           chunk=chunk, tb=tb, n1=N1, n2=N2, b=B,
                           lane_rem=lane_rem, row_rem=row_rem)

    grid_spec = pltpu.PrefetchScalarGridSpec(
        num_scalar_prefetch=1,                 # threshold -> SMEM (no recompile on growth)
        grid=(n_btiles, n_chunks),
        in_specs=[
            pl.BlockSpec((tb, chunk), lambda i, k, _: (i, k)),   # output1
            pl.BlockSpec((tb, chunk), lambda i, k, _: (i, k)),   # target1
            pl.BlockSpec((tb, N2), lambda i, k, _: (i, 0)),      # output2 (1 fetch / batch tile)
            pl.BlockSpec((tb, N2), lambda i, k, _: (i, 0)),      # target2
        ],
        out_specs=pl.BlockSpec((1, 1, 128), lambda i, k, _: (i, 0, 0)),
        scratch_shapes=[pltpu.VMEM((tb, 128), jnp.float32)],     # lane-parallel accumulator
    )

    bytes_accessed = int(2 * B * N1 * output1.dtype.itemsize
                         + 2 * B * N2 * output2.dtype.itemsize
                         + n_btiles * 128 * 4)
    cost = pl.CostEstimate(flops=int(3 * B * (N1 + N2) + 8 * B),
                           transcendentals=0,
                           bytes_accessed=bytes_accessed)

    partial = pl.pallas_call(
        kernel,
        grid_spec=grid_spec,
        out_shape=jax.ShapeDtypeStruct((n_btiles, 1, 128), jnp.float32),
        compiler_params=pltpu.CompilerParams(
            dimension_semantics=("parallel", "arbitrary"),
            vmem_limit_bytes=48 * 1024 * 1024),
        cost_estimate=cost,
    )(thr, output1, target1, output2, target2)

    # tiny cross-batch-tile reduction (n_btiles values) in plain XLA
    loss1 = jnp.sum(partial[:, 0, 0])
    loss2 = jnp.sum(partial[:, 0, 1])
    return loss1 + loss2, loss1, loss2


class SPLossYieldRa:
    """Python-side mirror of the nn.Module: holds threshold / growing_factor state."""

    def __init__(self, threshold, growing_factor):
        self.threshold = float(threshold)
        self.growing_factor = float(growing_factor)

    def increase_threshold(self):
        self.threshold *= self.growing_factor

    def __call__(self, output1, target1, output2, target2, val_flag):
        return spl_loss_yield_ra(output1, target1, output2, target2,
                                 self.threshold, val_flag=bool(val_flag))


# --------------------------- pure-JAX reference ---------------------------
def _ref(o1, t1, o2, t2, threshold, val_flag):
    o1 = jnp.asarray(o1, jnp.float32); t1 = jnp.asarray(t1, jnp.float32)
    o2 = jnp.asarray(o2, jnp.float32); t2 = jnp.asarray(t2, jnp.float32)
    sl1 = jnp.mean((o1 - t1) ** 2, axis=1)
    sl2 = jnp.mean((o2 - t2) ** 2, axis=1)
    if val_flag:
        l1 = jnp.mean(sl1)
        l2 = jnp.mean(sl2)
    else:
        v1 = (sl1 < threshold).astype(jnp.float32)
        v2 = (sl2 < threshold).astype(jnp.float32)
        l1 = jnp.mean(sl1 * v1)
        l2 = jnp.mean(sl2 * v2)
    return l1 + l2, l1, l2


def _check(got, want, rtol=1e-5, atol=1e-6):
    for g, w in zip(got, want):
        np.testing.assert_allclose(np.asarray(g), np.asarray(w), rtol=rtol, atol=atol)


# --------------------------------- main ---------------------------------
if __name__ == "__main__":
    key = jax.random.PRNGKey(0)

    # small shapes consistent with the module's use:
    #   output1 / target1: per-timestep predictions flattened over time (B, T*3)
    #   output2 / target2: annual yield (B, 1)
    B, T, C = 4, 8, 3
    k1, k2, k3, k4 = jax.random.split(key, 4)
    output1 = jax.random.normal(k1, (B, T * C), jnp.float32)
    target1 = jax.random.normal(k2, (B, T * C), jnp.float32)
    output2 = jax.random.normal(k3, (B, 1), jnp.float32)
    target2 = jax.random.normal(k4, (B, 1), jnp.float32)

    crit = SPLossYieldRa(threshold=1.5, growing_factor=1.2)

    # training (self-paced weighting) and validation modes
    for val_flag in (False, True):
        out = crit(output1, target1, output2, target2, val_flag)
        jax.block_until_ready(out)
        _check(out, _ref(output1, target1, output2, target2, crit.threshold, val_flag))

    # threshold growth: runtime scalar via SMEM prefetch -> no recompile, same results
    crit.increase_threshold()
    out = crit(output1, target1, output2, target2, False)
    jax.block_until_ready(out)
    _check(out, _ref(output1, target1, output2, target2, crit.threshold, False))

    # wider output1 to exercise the multi-chunk reduction + ragged lane masking
    B2, N1w = 6, 365 * 3
    k5, k6, k7, k8 = jax.random.split(jax.random.PRNGKey(1), 4)
    o1w = jax.random.normal(k5, (B2, N1w), jnp.float32)
    t1w = jax.random.normal(k6, (B2, N1w), jnp.float32)
    o2w = jax.random.normal(k7, (B2, 1), jnp.float32)
    t2w = jax.random.normal(k8, (B2, 1), jnp.float32)
    out = spl_loss_yield_ra(o1w, t1w, o2w, t2w, 1.5, val_flag=False, max_chunk=512)
    jax.block_until_ready(out)
    _check(out, _ref(o1w, t1w, o2w, t2w, 1.5, False))

    # multi-batch-tile path (parallel batch axis, partial last tile -> row masking)
    B3, N1b = 20, 300
    k9, k10, k11, k12 = jax.random.split(jax.random.PRNGKey(2), 4)
    o1b = jax.random.normal(k9, (B3, N1b), jnp.float32)
    t1b = jax.random.normal(k10, (B3, N1b), jnp.float32)
    o2b = jax.random.normal(k11, (B3, 1), jnp.float32)
    t2b = jax.random.normal(k12, (B3, 1), jnp.float32)
    for val_flag in (False, True):
        out = spl_loss_yield_ra(o1b, t1b, o2b, t2b, 1.5, val_flag=val_flag,
                                target_block_bytes=16384)
        jax.block_until_ready(out)
        _check(out, _ref(o1b, t1b, o2b, t2b, 1.5, val_flag))

    # native bf16 inputs: no wrapper cast/pad, per-tile upcast inside the kernel
    B4, N1c = 8, 200
    k13, k14, k15, k16 = jax.random.split(jax.random.PRNGKey(3), 4)
    o1c = jax.random.normal(k13, (B4, N1c), jnp.bfloat16)
    t1c = jax.random.normal(k14, (B4, N1c), jnp.bfloat16)
    o2c = jax.random.normal(k15, (B4, 1), jnp.bfloat16)
    t2c = jax.random.normal(k16, (B4, 1), jnp.bfloat16)
    out = spl_loss_yield_ra(o1c, t1c, o2c, t2c, 1.5, val_flag=False)
    jax.block_until_ready(out)
    _check(out, _ref(o1c, t1c, o2c, t2c, 1.5, False), rtol=1e-4, atol=1e-5)

    print("KERNEL_OK")
</pallas_src>

<mosaic_0001>
module attributes {stable_mosaic.version = 11 : i64} {
  func.func @kernel(%arg0: i32, %arg1: i32, %arg2: memref<1xf32, #tpu.memory_space<smem>>, %arg3: memref<4x128xf32, #tpu.memory_space<vmem>>, %arg4: memref<4x128xf32, #tpu.memory_space<vmem>>, %arg5: memref<4x1xf32, #tpu.memory_space<vmem>>, %arg6: memref<4x1xf32, #tpu.memory_space<vmem>>, %arg7: memref<1x1x128xf32, #tpu.memory_space<vmem>>, %arg8: memref<4x128xf32, #tpu.memory_space<vmem>>) attributes {dimension_semantics = [#tpu.dimension_semantics<parallel>, #tpu.dimension_semantics<arbitrary>], iteration_bounds = array<i64: 1, 1>, scalar_prefetch = 1 : i64, scratch_operands = 1 : i64, tpu.core_type = #tpu.core_type<tc>, window_params = [{transform_indices = @transform_0, window_bounds = array<i64: 4, 128>}, {transform_indices = @transform_1, window_bounds = array<i64: 4, 128>}, {transform_indices = @transform_2, window_bounds = array<i64: 4, 1>}, {transform_indices = @transform_3, window_bounds = array<i64: 4, 1>}, {transform_indices = @transform_4, window_bounds = array<i64: 1, 1, 128>}]} {
    %c0_i32 = arith.constant 0 : i32
    %0 = arith.cmpi eq, %arg1, %c0_i32 : i32
    %1 = arith.extui %0 : i1 to i32
    %c0_i32_0 = arith.constant 0 : i32
    %2 = arith.cmpi ne, %1, %c0_i32_0 : i32
    scf.if %2 {
      %cst = arith.constant 0.000000e+00 : f32
      %16 = vector.broadcast %cst : f32 to vector<4x128xf32>
      %c0_10 = arith.constant 0 : index
      %c0_11 = arith.constant 0 : index
      %17 = vector.load %arg8[%c0_10, %c0_11] : memref<4x128xf32, #tpu.memory_space<vmem>>, vector<4x128xf32>
      tpu.vector_store %arg8[%c0_10, %c0_11], %16 {strides = array<i32>} : memref<4x128xf32, #tpu.memory_space<vmem>>, vector<4x128xf32>,
    } else {
    }
    %c0 = arith.constant 0 : index
    %c0_1 = arith.constant 0 : index
    %3 = vector.load %arg3[%c0, %c0_1] : memref<4x128xf32, #tpu.memory_space<vmem>>, vector<4x128xf32>
    %c0_2 = arith.constant 0 : index
    %c0_3 = arith.constant 0 : index
    %4 = vector.load %arg4[%c0_2, %c0_3] : memref<4x128xf32, #tpu.memory_space<vmem>>, vector<4x128xf32>
    %5 = arith.subf %3, %4 : vector<4x128xf32>
    %6 = arith.mulf %5, %5 : vector<4x128xf32>
    %c0_i32_4 = arith.constant 0 : i32
    %7 = arith.cmpi eq, %arg1, %c0_i32_4 : i32
    %8 = arith.extui %7 : i1 to i32
    %c0_i32_5 = arith.constant 0 : i32
    %9 = arith.cmpi ne, %8, %c0_i32_5 : i32
    scf.if %9 {
      %16 = tpu.iota {dimensions = array<i32: 1>} : vector<4x128xi32>
      %c24_i32 = arith.constant 24 : i32
      %17 = vector.broadcast %c24_i32 : i32 to vector<4x128xi32>
      %18 = arith.cmpi slt, %16, %17 : vector<4x128xi32>
      %cst = arith.constant 0.000000e+00 : f32
      %19 = vector.broadcast %cst : f32 to vector<4x128xf32>
      %20 = arith.select %18, %6, %19 : vector<4x128xi1>, vector<4x128xf32>
      %c0_10 = arith.constant 0 : index
      %c0_11 = arith.constant 0 : index
      %21 = vector.load %arg8[%c0_10, %c0_11] : memref<4x128xf32, #tpu.memory_space<vmem>>, vector<4x128xf32>
      %22 = arith.addf %21, %20 : vector<4x128xf32>
      %c0_12 = arith.constant 0 : index
      %c0_13 = arith.constant 0 : index
      %23 = vector.load %arg8[%c0_12, %c0_13] : memref<4x128xf32, #tpu.memory_space<vmem>>, vector<4x128xf32>
      tpu.vector_store %arg8[%c0_12, %c0_13], %22 {strides = array<i32>} : memref<4x128xf32, #tpu.memory_space<vmem>>, vector<4x128xf32>,
    } else {
    }
    %c0_i32_6 = arith.constant 0 : i32
    %10 = arith.cmpi ne, %arg1, %c0_i32_6 : i32
    %11 = arith.extui %10 : i1 to i32
    %c0_i32_7 = arith.constant 0 : i32
    %12 = arith.cmpi ne, %11, %c0_i32_7 : i32
    scf.if %12 {
      %c0_10 = arith.constant 0 : index
      %c0_11 = arith.constant 0 : index
      %16 = vector.load %arg8[%c0_10, %c0_11] : memref<4x128xf32, #tpu.memory_space<vmem>>, vector<4x128xf32>
      %17 = arith.addf %16, %6 : vector<4x128xf32>
      %c0_12 = arith.constant 0 : index
      %c0_13 = arith.constant 0 : index
      %18 = vector.load %arg8[%c0_12, %c0_13] : memref<4x128xf32, #tpu.memory_space<vmem>>, vector<4x128xf32>
      tpu.vector_store %arg8[%c0_12, %c0_13], %17 {strides = array<i32>} : memref<4x128xf32, #tpu.memory_space<vmem>>, vector<4x128xf32>,
    } else {
    }
    %c0_i32_8 = arith.constant 0 : i32
    %13 = arith.cmpi eq, %arg1, %c0_i32_8 : i32
    %14 = arith.extui %13 : i1 to i32
    %c0_i32_9 = arith.constant 0 : i32
    %15 = arith.cmpi ne, %14, %c0_i32_9 : i32
    scf.if %15 {
      %c0_10 = arith.constant 0 : index
      %c0_11 = arith.constant 0 : index
      %16 = vector.load %arg8[%c0_10, %c0_11] : memref<4x128xf32, #tpu.memory_space<vmem>>, vector<4x128xf32>
      %cst = arith.constant dense<0.000000e+00> : vector<4xf32>
      %17 = vector.multi_reduction <add>, %16, %cst [1] : vector<4x128xf32> to vector<4xf32>
      %18 = vector.shape_cast %17 : vector<4xf32> to vector<4x1xf32>
      %cst_12 = arith.constant 0.0416666679 : f32
      %19 = vector.broadcast %cst_12 : f32 to vector<4x1xf32>
      %20 = arith.mulf %18, %19 : vector<4x1xf32>
      %c0_13 = arith.constant 0 : index
      %c0_14 = arith.constant 0 : index
      %21 = vector.load %arg5[%c0_13, %c0_14] : memref<4x1xf32, #tpu.memory_space<vmem>>, vector<4x1xf32>
      %c0_15 = arith.constant 0 : index
      %c0_16 = arith.constant 0 : index
      %22 = vector.load %arg6[%c0_15, %c0_16] : memref<4x1xf32, #tpu.memory_space<vmem>>, vector<4x1xf32>
      %23 = arith.subf %21, %22 : vector<4x1xf32>
      %24 = arith.mulf %23, %23 : vector<4x1xf32>
      %cst_17 = arith.constant dense<0.000000e+00> : vector<4xf32>
      %25 = vector.multi_reduction <add>, %24, %cst_17 [1] : vector<4x1xf32> to vector<4xf32>
      %26 = vector.shape_cast %25 : vector<4xf32> to vector<4x1xf32>
      %cst_18 = arith.constant 1.000000e+00 : f32
      %27 = vector.broadcast %cst_18 : f32 to vector<4x1xf32>
      %28 = arith.mulf %26, %27 : vector<4x1xf32>
      %c0_19 = arith.constant 0 : index
      %29 = memref.load %arg2[%c0_19] : memref<1xf32, #tpu.memory_space<smem>>
      %30 = vector.broadcast %29 : f32 to vector<4x1xf32>
      %31 = arith.cmpf olt, %20, %30 : vector<4x1xf32>
      %cst_20 = arith.constant 0.000000e+00 : f32
      %32 = vector.broadcast %cst_20 : f32 to vector<4x1xf32>
      %33 = arith.select %31, %20, %32 : vector<4x1xi1>, vector<4x1xf32>
      %34 = vector.broadcast %29 : f32 to vector<4x1xf32>
      %35 = arith.cmpf olt, %28, %34 : vector<4x1xf32>
      %cst_21 = arith.constant 0.000000e+00 : f32
      %36 = vector.broadcast %cst_21 : f32 to vector<4x1xf32>
      %37 = arith.select %35, %28, %36 : vector<4x1xi1>, vector<4x1xf32>
      %cst_22 = arith.constant dense<0.000000e+00> : vector<1xf32>
      %38 = vector.multi_reduction <add>, %33, %cst_22 [0] : vector<4x1xf32> to vector<1xf32>
      %39 = vector.shape_cast %38 : vector<1xf32> to vector<1x1xf32>
      %cst_23 = arith.constant 2.500000e-01 : f32
      %40 = vector.broadcast %cst_23 : f32 to vector<1x1xf32>
      %41 = arith.mulf %39, %40 : vector<1x1xf32>
      %42 = vector.shape_cast %41 : vector<1x1xf32> to vector<1x1x1xf32>
      %cst_24 = arith.constant dense<0.000000e+00> : vector<1xf32>
      %43 = vector.multi_reduction <add>, %37, %cst_24 [0] : vector<4x1xf32> to vector<1xf32>
      %44 = vector.shape_cast %43 : vector<1xf32> to vector<1x1xf32>
      %cst_25 = arith.constant 2.500000e-01 : f32
      %45 = vector.broadcast %cst_25 : f32 to vector<1x1xf32>
      %46 = arith.mulf %44, %45 : vector<1x1xf32>
      %47 = vector.shape_cast %46 : vector<1x1xf32> to vector<1x1x1xf32>
      %48 = vector.shape_cast %42 : vector<1x1x1xf32> to vector<1x1x1xf32>
      %49 = vector.broadcast %48 : vector<1x1x1xf32> to vector<1x1x128xf32>
      %50 = vector.shape_cast %47 : vector<1x1x1xf32> to vector<1x1x1xf32>
      %51 = vector.broadcast %50 : vector<1x1x1xf32> to vector<1x1x128xf32>
      %52 = tpu.iota {dimensions = array<i32: 2>} : vector<1x1x128xi32>
      %c0_i32_26 = arith.constant 0 : i32
      %53 = vector.broadcast %c0_i32_26 : i32 to vector<1x1x128xi32>
      %54 = arith.cmpi eq, %52, %53 : vector<1x1x128xi32>
      %c1_i32 = arith.constant 1 : i32
      %55 = vector.broadcast %c1_i32 : i32 to vector<1x1x128xi32>
      %56 = arith.cmpi eq, %52, %55 : vector<1x1x128xi32>
      %cst_27 = arith.constant 0.000000e+00 : f32
      %57 = vector.broadcast %cst_27 : f32 to vector<1x1x128xf32>
      %58 = arith.select %56, %51, %57 : vector<1x1x128xi1>, vector<1x1x128xf32>
      %59 = arith.select %54, %49, %58 : vector<1x1x128xi1>, vector<1x1x128xf32>
      %c0_28 = arith.constant 0 : index
      %c0_29 = arith.constant 0 : index
      %c0_30 = arith.constant 0 : index
      %60 = vector.load %arg7[%c0_28, %c0_29, %c0_30] : memref<1x1x128xf32, #tpu.memory_space<vmem>>, vector<1x1x128xf32>
      tpu.vector_store %arg7[%c0_28, %c0_29, %c0_30], %59 {strides = array<i32>} : memref<1x1x128xf32, #tpu.memory_space<vmem>>, vector<1x1x128xf32>,
    } else {
    }
    return
  }
  func.func @transform_0(%arg0: i32, %arg1: i32, %arg2: memref<1xf32, #tpu.memory_space<smem>>) -> (i32, i32) {
    %c0_i32 = arith.constant 0 : i32
    return %arg0, %arg1 : i32, i32
  }
  func.func @transform_1(%arg0: i32, %arg1: i32, %arg2: memref<1xf32, #tpu.memory_space<smem>>) -> (i32, i32) {
    %c0_i32 = arith.constant 0 : i32
    return %arg0, %arg1 : i32, i32
  }
  func.func @transform_2(%arg0: i32, %arg1: i32, %arg2: memref<1xf32, #tpu.memory_space<smem>>) -> (i32, i32) {
    %c0_i32 = arith.constant 0 : i32
    %c0_i32_0 = arith.constant 0 : i32
    return %arg0, %c0_i32 : i32, i32
  }
  func.func @transform_3(%arg0: i32, %arg1: i32, %arg2: memref<1xf32, #tpu.memory_space<smem>>) -> (i32, i32) {
    %c0_i32 = arith.constant 0 : i32
    %c0_i32_0 = arith.constant 0 : i32
    return %arg0, %c0_i32 : i32, i32
  }
  func.func @transform_4(%arg0: i32, %arg1: i32, %arg2: memref<1xf32, #tpu.memory_space<smem>>) -> (i32, i32, i32) {
    %c0_i32 = arith.constant 0 : i32
    %c0_i32_0 = arith.constant 0 : i32
    %c0_i32_1 = arith.constant 0 : i32
    return %arg0, %c0_i32, %c0_i32_0 : i32, i32, i32
  }
}

</mosaic_0001>

<bundles_post_ra>
// kernel: spl_loss_yield_ra.1
= control target key start
LH: loop header
LB: loop body
LE: loop exit
PB: predicated region body
PF: predicated region fallthrough
CT: control target
= control target key end

     0   :  { %v31_v0 = vlaneseq  ;;  %v101_v1 = vmov 0.0   ;;  %v102_v4 = vmov 0   ;;  %vm73_vm2 = vcmask 3072   ;;  %s151_s1 = inlined_call_operand.vmem [shape: f32[4,24], index: 1, kind: input, shape index: {}]   ;;  %s152_s2 = inlined_call_operand.vmem [shape: f32[4,24], index: 2, kind: input, shape index: {}]   ;;  %s153_s3 = inlined_call_operand.vmem [shape: f32[4,1], index: 3, kind: input, shape index: {}]   ;;  %s154_s4 = inlined_call_operand.vmem [shape: f32[4,1], index: 4, kind: input, shape index: {}]   ;;  %s155_s0 = inlined_call_operand.<no memory space> [shape: f32[1], index: 0, kind: input, shape index: {}]   ;;  %s156_s5 = inlined_call_operand.vmem [shape: f32[1,1,128], index: 5, kind: output, shape index: {}]  }
   0x1   :  { %23 = vst [vmem:[#allocation2] sm:$0xf] %v101_v1  ;;  %v24_v2 = vld [vmem:[%s151_s1] sm:$0xf]  ;;  %100 = vset.pattern.permute.xlu0 %v102_v4  ;;  %v60_v11 = vstv %s155_s0  ;;  %vm49_vm3 = vcmask 1043456  }
   0x2   :  { %v25_v3 = vld [vmem:[%s152_s2] sm:$0xf]  ;;  %v32_v7 = vand.u32 127, %v31_v0 }
   0x3   :  { %v54_v5 = vld [vmem:[%s153_s3] sm:$0xf]  ;;  %v26_v6 = vsub.f32 %v24_v2, %v25_v3 }
   0x4   :  { %v55_v8 = vld [vmem:[%s154_s4] sm:$0xf]  ;;  %vm33_vm0 = vcmp.lt.s32.totalorder %v32_v7, 24  ;;  %vm90_vm5 = vcmp.eq.s32.totalorder %v32_v7, 1  ;;  %vm89_vm6 = vcmp.eq.s32.totalorder %v32_v7, 0 }
   0x5   :  { %v56_v9 = vsub.f32 %v54_v5, %v55_v8  ;;  %v27_v10 = vmul.f32 %v26_v6, %v26_v6 }
   0x7   :  { %v57_v12 = vmul.f32 %v56_v9, %v56_v9  ;;  %v34_v13 = vsel %vm33_vm0, %v27_v10, 0.0 }
   0x8   :  { %v35_v14 = vld [vmem:[#allocation2] sm:$0xf] }
   0x9   :  { %vm63_vm1 = vcmp.lt.f32.partialorder %v57_v12, %v60_v11  ;;  %v36_v16 = vadd.f32 %v35_v14, %v34_v13 }
   0xa   :  { %v64_v15 = vsel %vm63_vm1, %v57_v12, 0.0 }
   0xb   :  { %37 = vst [vmem:[#allocation2] sm:$0xf] %v36_v16  ;;  %v74_v17 = vsel %vm73_vm2, %v64_v15, 0.0 }
   0xc   :  { %v75_v18 = vrot.slane %v74_v17, 4 }
   0xe   :  { %v76_v20 = vadd.f32 %v75_v18, %v74_v17 }
  0x10   :  { %v77_v22 = vrot.slane %v76_v20, 2 }
  0x12   :  { %v48_v19 = vld [vmem:[#allocation2] sm:$0xf]  ;;  %v78_v23 = vadd.f32 %v77_v22, %v76_v20 }
  0x13   :  { %v50_v21 = vsel %vm49_vm3, %v48_v19, 0.0 }
  0x14   :  { %51 = vadd.xlane.f32.xlu0 %v50_v21  ;;  %v79_v24 = vrot.slane %v78_v23, 1 }
  0x16   :  { %v80_v25 = vadd.f32 %v79_v24, %v78_v23 }
  0x18   :  { %v81_v26 = vmul.f32 0.25, %v80_v25 }
  0x2a   :  { %84 = vperm.xlu0 %100, %v81_v26  }
  0xa1   :  { %v52_v27 = vpop.xlane.xlu0 %51 }
  0xa2   :  { %v53_v28 = vmul.f32 0.041666668, %v52_v27 }
  0xa4   :  { %vm61_vm4 = vcmp.lt.f32.partialorder %v53_v28, %v60_v11 }
  0xa5   :  { %v62_v29 = vsel %vm61_vm4, %v53_v28, 0.0 }
  0xa6   :  { %v65_v30 = vsel %vm49_vm3, %v62_v29, 0.0 }
  0xa7   :  { %v66_v31 = vrot.slane %v65_v30, 4 }
  0xa9   :  { %v67_v32 = vadd.f32 %v66_v31, %v65_v30  ;;  %v85_v36 = vpop.permute.xlu0 %84 }
  0xaa   :  { %v91_v38 = vsel %vm90_vm5, %v85_v36, 0.0 }
  0xab   :  { %v68_v33 = vrot.slane %v67_v32, 2 }
  0xad   :  { %v69_v34 = vadd.f32 %v68_v33, %v67_v32 }
  0xaf   :  { %v70_v35 = vrot.slane %v69_v34, 1 }
  0xb1   :  { %v71_v37 = vadd.f32 %v70_v35, %v69_v34 }
  0xb3   :  { %v72_v39 = vmul.f32 0.25, %v71_v37 }
  0xb5   :  { %v92_v40 = vsel %vm89_vm6, %v72_v39, %v91_v38 }
  0xb6   :  { %93 = vst [vmem:[%s156_s5] sm:$0x1] %v92_v40 }

</bundles_post_ra>
